<compile_context>
chip_gen: v6e
topology: v6e:2x2x1
jax: 0.10.0
libtpu: 0.0.40
codegen_flags: <defaults>
</compile_context>

<pallas_src>
import functools

import jax
import jax.numpy as jnp
from jax.experimental import pallas as pl
from jax.experimental.pallas import tpu as pltpu

_NEG_BIG = -1e30  # finite stand-in for -inf in padded logit columns
_IGNORE_INDEX = -100  # torch.nn.CrossEntropyLoss default


def _round_up(x, m):
    return ((x + m - 1) // m) * m


def _logits_kernel(prot_ref, rna_ref, wp_ref, wr_ref, b_ref, out_ref):
    """Classifier head only (inference path, labels is None)."""
    logits = (
        jnp.dot(prot_ref[...], wp_ref[...], preferred_element_type=jnp.float32)
        + jnp.dot(rna_ref[...], wr_ref[...], preferred_element_type=jnp.float32)
        + b_ref[...].astype(jnp.float32)
    )  # [TILE_B, Lp]
    out_ref[...] = logits.astype(out_ref.dtype)


def _logits_ce_kernel(num_labels, prot_ref, rna_ref, wp_ref, wr_ref, b_ref,
                      labels_ref, out_ref):
    """Classifier head + per-row cross-entropy, packed into one lane-dense slab.

    out[:, :num_labels] = logits
    out[:, num_labels]  = per-row CE loss
    Padded bias columns were pre-set to -1e30, so they contribute ~0 to the
    softmax denominator and never win the row max.
    """
    logits = (
        jnp.dot(prot_ref[...], wp_ref[...], preferred_element_type=jnp.float32)
        + jnp.dot(rna_ref[...], wr_ref[...], preferred_element_type=jnp.float32)
        + b_ref[...].astype(jnp.float32)
    )  # [TILE_B, Lp] f32

    # Numerically stable cross-entropy: logsumexp(logits) - logits[label]
    m = jnp.max(logits, axis=-1, keepdims=True)                         # [TB, 1]
    lse = m + jnp.log(jnp.sum(jnp.exp(logits - m), axis=-1, keepdims=True))
    labels = labels_ref[...]                                            # [TB, 1] i32
    col = jax.lax.broadcasted_iota(jnp.int32, logits.shape, 1)          # [TB, Lp]
    picked = jnp.sum(jnp.where(col == labels, logits, 0.0),
                     axis=-1, keepdims=True)                            # [TB, 1]
    per_row_loss = lse - picked                                         # [TB, 1]

    # Pack: real logits in cols [0, num_labels), per-row loss in col num_labels.
    out_ref[...] = jnp.where(col == num_labels, per_row_loss,
                             logits).astype(out_ref.dtype)


def protein_rna_inter_forward(prot_out, rna_out, w, b, labels=None, *,
                              tile_b=256):
    """Classifier head + cross-entropy of ProteinRNAInter.

    Args:
      prot_out: [B, Hp] pooled protein embedding (prot_model(...)[1]).
      rna_out:  [B, Hr] pooled RNA embedding     (rna_model(...)[1]).
      w:        [Hp + Hr, L] classifier weight (transposed nn.Linear weight).
      b:        [L] classifier bias.
      labels:   [B] int labels or None (ignore_index=-100 honored).
      tile_b:   batch tile size (rows per grid step).

    Returns:
      (loss, logits): scalar mean cross-entropy (None if labels is None) and
      [B, L] logits.
    """
    B, Hp = prot_out.shape
    Hr = rna_out.shape[1]
    Hin, L = w.shape
    assert Hin == Hp + Hr

    # Lane-dense shapes: hidden dims and logit width padded to multiples of 128
    # (logit width gets one extra slot for the packed per-row loss).
    Hp_p = _round_up(Hp, 128)
    Hr_p = _round_up(Hr, 128)
    Lp = _round_up(L + 1, 128)

    # One-time layout plumbing on the (small) classifier params:
    #  * split the weight into the protein / RNA halves -> no in-kernel slicing,
    #  * zero-pad extra rows (padded hidden dims) and extra cols,
    #  * -1e30 bias in padded cols so padded logits vanish in the softmax.
    w_prot = jnp.zeros((Hp_p, Lp), w.dtype).at[:Hp, :L].set(w[:Hp])
    w_rna = jnp.zeros((Hr_p, Lp), w.dtype).at[:Hr, :L].set(w[Hp:])
    b_pad = jnp.full((1, Lp), _NEG_BIG, jnp.float32).at[0, :L].set(
        b.astype(jnp.float32))

    # Pad activations on the hidden dim (zeros x zero weight rows == no-op).
    if Hp_p != Hp:
        prot_out = jnp.pad(prot_out, ((0, 0), (0, Hp_p - Hp)))
    if Hr_p != Hr:
        rna_out = jnp.pad(rna_out, ((0, 0), (0, Hr_p - Hr)))

    # Batch tiling: TILE_B multiple of 8, batch padded up to a whole tile.
    tb = min(tile_b, _round_up(B, 8))
    Bp = pl.cdiv(B, tb) * tb
    if Bp != B:
        prot_out = jnp.pad(prot_out, ((0, Bp - B), (0, 0)))
        rna_out = jnp.pad(rna_out, ((0, Bp - B), (0, 0)))

    grid = (Bp // tb,)
    row_spec = lambda h: pl.BlockSpec((tb, h), lambda i: (i, 0))
    const_spec = lambda shp: pl.BlockSpec(shp, lambda i: (0, 0))  # VMEM-resident
    out_spec = pl.BlockSpec((tb, Lp), lambda i: (i, 0))
    cparams = pltpu.CompilerParams(dimension_semantics=("parallel",))

    if labels is None:
        slab = pl.pallas_call(
            _logits_kernel,
            out_shape=jax.ShapeDtypeStruct((Bp, Lp), jnp.float32),
            grid=grid,
            in_specs=[row_spec(Hp_p), row_spec(Hr_p),
                      const_spec((Hp_p, Lp)), const_spec((Hr_p, Lp)),
                      const_spec((1, Lp))],
            out_specs=out_spec,
            compiler_params=cparams,
        )(prot_out, rna_out, w_prot, w_rna, b_pad)
        return None, slab[:B, :L]

    labels_arr = labels.reshape(B, 1).astype(jnp.int32)
    if Bp != B:
        labels_arr = jnp.pad(labels_arr, ((0, Bp - B), (0, 0)))

    slab = pl.pallas_call(
        functools.partial(_logits_ce_kernel, L),
        out_shape=jax.ShapeDtypeStruct((Bp, Lp), jnp.float32),
        grid=grid,
        in_specs=[row_spec(Hp_p), row_spec(Hr_p),
                  const_spec((Hp_p, Lp)), const_spec((Hr_p, Lp)),
                  const_spec((1, Lp)), row_spec(1)],
        out_specs=out_spec,
        compiler_params=cparams,
    )(prot_out, rna_out, w_prot, w_rna, b_pad, labels_arr)

    logits = slab[:B, :L]
    per_row_loss = slab[:B, L]
    # CrossEntropyLoss(ignore_index=-100): masked mean over valid rows.
    valid = (labels.astype(jnp.int32) != _IGNORE_INDEX).astype(jnp.float32)
    n_valid = jnp.maximum(jnp.sum(valid), 1.0)
    loss = jnp.sum(per_row_loss * valid) / n_valid
    return loss, logits


if __name__ == "__main__":
    key = jax.random.PRNGKey(0)
    k_prot, k_rna, k_w, k_b, k_lab = jax.random.split(key, 5)

    # Small shapes consistent with the module's forward.
    B = 8                      # batch
    Hp = 32                    # prot_config.hidden_size
    Hr = 32                    # rna_config.hidden_size
    L = 4                      # prot_config.num_labels

    prot_out = jax.random.normal(k_prot, (B, Hp), dtype=jnp.float32)
    rna_out = jax.random.normal(k_rna, (B, Hr), dtype=jnp.float32)

    # Classifier params (nn.Linear(Hp+Hr, L)), stored as (in, out).
    w = jax.random.normal(k_w, (Hp + Hr, L), dtype=jnp.float32) * 0.02
    bias = jax.random.normal(k_b, (L,), dtype=jnp.float32) * 0.02
    labels = jax.random.randint(k_lab, (B,), 0, L, dtype=jnp.int32)

    loss, logits = protein_rna_inter_forward(prot_out, rna_out, w, bias, labels)
    _, logits_nolab = protein_rna_inter_forward(prot_out, rna_out, w, bias, None)

    # ignore_index=-100 path.
    labels_ig = labels.at[0].set(_IGNORE_INDEX)
    loss_ig, _ = protein_rna_inter_forward(prot_out, rna_out, w, bias, labels_ig)
    jax.block_until_ready((loss, logits, logits_nolab, loss_ig))

    # Reference check in plain JAX (concat + linear + CE).
    ref_logits = jnp.concatenate([prot_out, rna_out], axis=-1) @ w + bias
    ref_lse = jax.nn.logsumexp(ref_logits, axis=-1)
    ref_pick = jnp.take_along_axis(ref_logits, labels[:, None], axis=-1)[:, 0]
    ref_loss = jnp.mean(ref_lse - ref_pick)

    safe = jnp.clip(labels_ig, 0, L - 1)
    ref_pick_ig = jnp.take_along_axis(ref_logits, safe[:, None], axis=-1)[:, 0]
    valid = (labels_ig != _IGNORE_INDEX).astype(jnp.float32)
    ref_loss_ig = jnp.sum((ref_lse - ref_pick_ig) * valid) / jnp.sum(valid)

    assert jnp.allclose(logits, ref_logits, atol=1e-5, rtol=1e-5)
    assert jnp.allclose(logits_nolab, ref_logits, atol=1e-5, rtol=1e-5)
    assert jnp.allclose(loss, ref_loss, atol=1e-5, rtol=1e-5)
    assert jnp.allclose(loss_ig, ref_loss_ig, atol=1e-5, rtol=1e-5)

    print("KERNEL_OK")
</pallas_src>

<mosaic_0001>
module attributes {stable_mosaic.version = 11 : i64} {
  func.func @_logits_ce_kernel(%arg0: i32, %arg1: memref<8x128xf32, #tpu.memory_space<vmem>>, %arg2: memref<8x128xf32, #tpu.memory_space<vmem>>, %arg3: memref<128x128xf32, #tpu.memory_space<vmem>>, %arg4: memref<128x128xf32, #tpu.memory_space<vmem>>, %arg5: memref<1x128xf32, #tpu.memory_space<vmem>>, %arg6: memref<8x1xi32, #tpu.memory_space<vmem>>, %arg7: memref<8x128xf32, #tpu.memory_space<vmem>>) attributes {dimension_semantics = [#tpu.dimension_semantics<parallel>], iteration_bounds = array<i64: 1>, scalar_prefetch = 0 : i64, scratch_operands = 0 : i64, tpu.core_type = #tpu.core_type<tc>, window_params = [{transform_indices = @transform_0, window_bounds = array<i64: 8, 128>}, {transform_indices = @transform_1, window_bounds = array<i64: 8, 128>}, {pipeline_mode = #tpu.pipeline_mode<synchronous>, transform_indices = @transform_2, window_bounds = array<i64: 128, 128>}, {pipeline_mode = #tpu.pipeline_mode<synchronous>, transform_indices = @transform_3, window_bounds = array<i64: 128, 128>}, {pipeline_mode = #tpu.pipeline_mode<synchronous>, transform_indices = @transform_4, window_bounds = array<i64: 1, 128>}, {transform_indices = @transform_5, window_bounds = array<i64: 8, 1>}, {transform_indices = @transform_6, window_bounds = array<i64: 8, 128>}]} {
    %c0 = arith.constant 0 : index
    %c0_0 = arith.constant 0 : index
    %0 = vector.load %arg1[%c0, %c0_0] : memref<8x128xf32, #tpu.memory_space<vmem>>, vector<8x128xf32>
    %c0_1 = arith.constant 0 : index
    %c0_2 = arith.constant 0 : index
    %1 = vector.load %arg3[%c0_1, %c0_2] : memref<128x128xf32, #tpu.memory_space<vmem>>, vector<128x128xf32>
    %cst = arith.constant dense<0.000000e+00> : vector<8x128xf32>
    %2 = tpu.matmul %0, %1, %cst {dimension_numbers = #tpu.dot_dimension_numbers<[1], [0], [0], [1], [0, 0, 1, 1], [], []>} : vector<8x128xf32>, vector<128x128xf32>, vector<8x128xf32> -> vector<8x128xf32>
    %c0_3 = arith.constant 0 : index
    %c0_4 = arith.constant 0 : index
    %3 = vector.load %arg2[%c0_3, %c0_4] : memref<8x128xf32, #tpu.memory_space<vmem>>, vector<8x128xf32>
    %c0_5 = arith.constant 0 : index
    %c0_6 = arith.constant 0 : index
    %4 = vector.load %arg4[%c0_5, %c0_6] : memref<128x128xf32, #tpu.memory_space<vmem>>, vector<128x128xf32>
    %cst_7 = arith.constant dense<0.000000e+00> : vector<8x128xf32>
    %5 = tpu.matmul %3, %4, %cst_7 {dimension_numbers = #tpu.dot_dimension_numbers<[1], [0], [0], [1], [0, 0, 1, 1], [], []>} : vector<8x128xf32>, vector<128x128xf32>, vector<8x128xf32> -> vector<8x128xf32>
    %6 = arith.addf %2, %5 : vector<8x128xf32>
    %c0_8 = arith.constant 0 : index
    %c0_9 = arith.constant 0 : index
    %7 = vector.load %arg5[%c0_8, %c0_9] : memref<1x128xf32, #tpu.memory_space<vmem>>, vector<1x128xf32>
    %8 = vector.broadcast %7 : vector<1x128xf32> to vector<8x128xf32>
    %9 = arith.addf %6, %8 : vector<8x128xf32>
    %cst_10 = arith.constant dense<0xFF800000> : vector<8xf32>
    %10 = vector.multi_reduction <maximumf>, %9, %cst_10 [1] : vector<8x128xf32> to vector<8xf32>
    %11 = vector.shape_cast %10 : vector<8xf32> to vector<8x1xf32>
    %12 = vector.broadcast %11 : vector<8x1xf32> to vector<8x128xf32>
    %13 = arith.subf %9, %12 : vector<8x128xf32>
    %14 = math.exp %13 : vector<8x128xf32>
    %cst_11 = arith.constant dense<0.000000e+00> : vector<8xf32>
    %15 = vector.multi_reduction <add>, %14, %cst_11 [1] : vector<8x128xf32> to vector<8xf32>
    %16 = vector.shape_cast %15 : vector<8xf32> to vector<8x1xf32>
    %17 = math.log %16 : vector<8x1xf32>
    %18 = arith.addf %11, %17 : vector<8x1xf32>
    %c0_12 = arith.constant 0 : index
    %c0_13 = arith.constant 0 : index
    %19 = vector.load %arg6[%c0_12, %c0_13] : memref<8x1xi32, #tpu.memory_space<vmem>>, vector<8x1xi32>
    %20 = tpu.iota {dimensions = array<i32: 1>} : vector<8x128xi32>
    %21 = vector.broadcast %19 : vector<8x1xi32> to vector<8x128xi32>
    %22 = arith.cmpi eq, %20, %21 : vector<8x128xi32>
    %cst_14 = arith.constant 0.000000e+00 : f32
    %23 = vector.broadcast %cst_14 : f32 to vector<8x128xf32>
    %24 = arith.select %22, %9, %23 : vector<8x128xi1>, vector<8x128xf32>
    %cst_15 = arith.constant dense<0.000000e+00> : vector<8xf32>
    %25 = vector.multi_reduction <add>, %24, %cst_15 [1] : vector<8x128xf32> to vector<8xf32>
    %26 = vector.shape_cast %25 : vector<8xf32> to vector<8x1xf32>
    %27 = arith.subf %18, %26 : vector<8x1xf32>
    %c4_i32 = arith.constant 4 : i32
    %28 = vector.broadcast %c4_i32 : i32 to vector<8x128xi32>
    %29 = arith.cmpi eq, %20, %28 : vector<8x128xi32>
    %30 = vector.shape_cast %27 : vector<8x1xf32> to vector<8x1xf32>
    %31 = vector.broadcast %30 : vector<8x1xf32> to vector<8x128xf32>
    %32 = arith.select %29, %31, %9 : vector<8x128xi1>, vector<8x128xf32>
    %c0_16 = arith.constant 0 : index
    %c0_17 = arith.constant 0 : index
    %33 = vector.load %arg7[%c0_16, %c0_17] : memref<8x128xf32, #tpu.memory_space<vmem>>, vector<8x128xf32>
    tpu.vector_store %arg7[%c0_16, %c0_17], %32 {strides = array<i32>} : memref<8x128xf32, #tpu.memory_space<vmem>>, vector<8x128xf32>,
    return
  }
  func.func @transform_0(%arg0: i32) -> (i32, i32) {
    %c0_i32 = arith.constant 0 : i32
    %c0_i32_0 = arith.constant 0 : i32
    return %arg0, %c0_i32 : i32, i32
  }
  func.func @transform_1(%arg0: i32) -> (i32, i32) {
    %c0_i32 = arith.constant 0 : i32
    %c0_i32_0 = arith.constant 0 : i32
    return %arg0, %c0_i32 : i32, i32
  }
  func.func @transform_2(%arg0: i32) -> (i32, i32) {
    %c0_i32 = arith.constant 0 : i32
    %c0_i32_0 = arith.constant 0 : i32
    %c0_i32_1 = arith.constant 0 : i32
    return %c0_i32, %c0_i32_0 : i32, i32
  }
  func.func @transform_3(%arg0: i32) -> (i32, i32) {
    %c0_i32 = arith.constant 0 : i32
    %c0_i32_0 = arith.constant 0 : i32
    %c0_i32_1 = arith.constant 0 : i32
    return %c0_i32, %c0_i32_0 : i32, i32
  }
  func.func @transform_4(%arg0: i32) -> (i32, i32) {
    %c0_i32 = arith.constant 0 : i32
    %c0_i32_0 = arith.constant 0 : i32
    %c0_i32_1 = arith.constant 0 : i32
    return %c0_i32, %c0_i32_0 : i32, i32
  }
  func.func @transform_5(%arg0: i32) -> (i32, i32) {
    %c0_i32 = arith.constant 0 : i32
    %c0_i32_0 = arith.constant 0 : i32
    return %arg0, %c0_i32 : i32, i32
  }
  func.func @transform_6(%arg0: i32) -> (i32, i32) {
    %c0_i32 = arith.constant 0 : i32
    %c0_i32_0 = arith.constant 0 : i32
    return %arg0, %c0_i32 : i32, i32
  }
}

</mosaic_0001>

<bundles_post_ra>
// kernel: tpu_custom_call.1
= control target key start
LH: loop header
LB: loop body
LE: loop exit
PB: predicated region body
PF: predicated region fallthrough
CT: control target
= control target key end

     0   :  { %11 = vsyncpa [#allocation3], 0  ;;  %s589_s0 = inlined_call_operand.vmem [shape: f32[8,128], index: 0, kind: input, shape index: {}]   ;;  %s590_s1 = inlined_call_operand.hbm [shape: f32[8,128], index: 1, kind: input, shape index: {}]   ;;  %s591_s2 = inlined_call_operand.hbm [shape: f32[128,128], index: 2, kind: input, shape index: {}]   ;;  %s592_s3 = inlined_call_operand.hbm [shape: f32[128,128], index: 3, kind: input, shape index: {}]   ;;  %s593_s4 = inlined_call_operand.vmem [shape: f32[1,128], index: 4, kind: input, shape index: {}]   ;;  %s594_s5 = inlined_call_operand.vmem [shape: s32[8,1], index: 5, kind: input, shape index: {}]   ;;  %s595_s6 = inlined_call_operand.hbm [shape: f32[8,128], index: 6, kind: output, shape index: {}]  }
   0x1   :  { %12 = vsyncpa [#allocation6], 0 }
   0x2   :  { %13 = vsyncpa [#allocation4], 0  ;;  %s490_s21 = smov [#allocation5]  }
   0x3   :  { %s31_s22 = sshll.u32 %s490_s21, 4  ;;  %s32_s22 = int_to_ptr.vmem [resolvable:$true] %s31_s22 }
   0x4   :  { %s412_s23 = scalar_lea.vmem %s32_s22, 2048  ;;  %p417_p1 = scmp.lt.s32.totalorder %s32_s22, %s32_s22 }
   0x5   :  { %p413_p0 = scmp.ne.s32.totalorder %s32_s22, %s412_s23  ;;  %p418_p2 = scmp.lt.s32.totalorder %s412_s23, %s412_s23 }
   0x7   :  { %p419_p3 = por %p418_p2, %p417_p1 }
   0x9   :  { %p420_p4 = pnand %p419_p3, %p413_p0 }
   0xb   :  { %423 = shalt.err (!%p420_p4)
}
   0xc   :  { %s491_s24 = smov 128   ;;  %s492_s25 = smov 8  }
   0xd   :  { %37 = dma.hbm_to_vmem [thread:$0]  %s591_s2, 2048, %s32_s22, [#allocation6], %s491_s24, %s491_s24, %s492_s25  }
   0xe   :  { %s493_s28 = smov [#allocation2]   ;;  %s494_s30 = smov [#allocation7]  }
   0xf   :  { %s22_s29 = sshll.u32 %s493_s28, 4  ;;  %s43_s7 = sshll.u32 %s494_s30, 4  ;;  %s23_s29 = int_to_ptr.vmem [resolvable:$true] %s22_s29  ;;  %s44_s7 = int_to_ptr.vmem [resolvable:$true] %s43_s7 }
  0x10   :  { %s432_s8 = scalar_lea.vmem %s23_s29, 128  ;;  %p437_p6 = scmp.lt.s32.totalorder %s23_s29, %s23_s29 }
  0x11   :  { %p433_p5 = scmp.ne.s32.totalorder %s23_s29, %s432_s8  ;;  %p438_p7 = scmp.lt.s32.totalorder %s432_s8, %s432_s8 }
  0x13   :  { %p439_p8 = por %p438_p7, %p437_p6 }
  0x15   :  { %p440_p9 = pnand %p439_p8, %p433_p5 }
  0x17   :  { %443 = shalt.err (!%p440_p9)
}
  0x18   :  { %25 = dma.hbm_to_vmem [thread:$0]  %s590_s1, 128, %s23_s29, [#allocation3]  }
  0x19   :  { %s452_s11 = scalar_lea.vmem %s44_s7, 2048  ;;  %p457_p11 = scmp.lt.s32.totalorder %s44_s7, %s44_s7 }
  0x1a   :  { %p453_p10 = scmp.ne.s32.totalorder %s44_s7, %s452_s11  ;;  %p458_p12 = scmp.lt.s32.totalorder %s452_s11, %s452_s11 }
  0x1c   :  { %p459_p13 = por %p458_p12, %p457_p11 }
  0x1e   :  { %p460_p0 = pnand %p459_p13, %p453_p10 }
  0x20   :  { %463 = shalt.err (!%p460_p0)
}
  0x21   :  { %49 = dma.hbm_to_vmem [thread:$0]  %s592_s3, 2048, %s44_s7, [#allocation6], %s491_s24, %s491_s24, %s492_s25  }
  0x22   :  { %484 = dma.done.wait [#allocation3], 128  }
  0x23   :  { %485 = vsyncadd [#allocation3], 4294967168 }
  0x24   :  { %486 = dma.done.wait [#allocation6], 4096  }
  0x25   :  { %487 = vsyncadd [#allocation6], 4294963200  ;;  %v495_v0 = vmov 0.0   ;;  %vm496_vm0 = vmmov 0   ;;  %v96_v1 = vld [vmem:[#allocation7 + $0x78] sm:$0xff]  ;;  %v95_v3 = vld [vmem:[#allocation7 + $0x70] sm:$0xff]  ;;  %v256_v47 = vlaneseq }
  0x26   :  { %320 = vmatprep.subr.mxu0 %v495_v0  ;;  %355 = vmatprep.subr.mxu1 %v495_v0  ;;  %v79_v2 = vld [vmem:[#allocation5 + $0x78] sm:$0xff]  ;;  %v78_v4 = vld [vmem:[#allocation5 + $0x70] sm:$0xff]  ;;  %v94_v5 = vld [vmem:[#allocation7 + $0x68] sm:$0xff]  ;;  %v497_v35 = vmov 0  }
  0x27   :  { %352 = vmatprep.mubr.msk.f32.mxu0 %vm496_vm0, %v495_v0  ;;  %387 = vmatprep.mubr.msk.f32.mxu1 %vm496_vm0, %v495_v0  ;;  %v77_v6 = vld [vmem:[#allocation5 + $0x68] sm:$0xff]  ;;  %v93_v7 = vld [vmem:[#allocation7 + $0x60] sm:$0xff]  ;;  %v92_v9 = vld [vmem:[#allocation7 + $0x58] sm:$0xff]  ;;  %v257_v48 = vand.u32 127, %v256_v47 }
  0x28   :  { %321 = vmatpush3.msra.mxu0 %v96_v1  ;;  %356 = vmatpush3.msra.mxu1 %v79_v2  ;;  %v76_v8 = vld [vmem:[#allocation5 + $0x60] sm:$0xff]  ;;  %v75_v10 = vld [vmem:[#allocation5 + $0x58] sm:$0xff]  ;;  %v91_v11 = vld [vmem:[#allocation7 + $0x50] sm:$0xff] }
  0x29   :  { %322 = vmatprep.subr.mxu0 %v495_v0  ;;  %357 = vmatprep.subr.mxu1 %v495_v0  ;;  %v74_v12 = vld [vmem:[#allocation5 + $0x50] sm:$0xff]  ;;  %v90_v13 = vld [vmem:[#allocation7 + $0x48] sm:$0xff]  ;;  %v89_v15 = vld [vmem:[#allocation7 + $0x40] sm:$0xff]  ;;  %vm266_vm2 = vcmp.eq.s32.totalorder %v257_v48, 4 }
  0x2a   :  { %323 = vmatpush3.msra.mxu0 %v95_v3  ;;  %358 = vmatpush3.msra.mxu1 %v78_v4  ;;  %v73_v14 = vld [vmem:[#allocation5 + $0x48] sm:$0xff]  ;;  %v72_v16 = vld [vmem:[#allocation5 + $0x40] sm:$0xff]  ;;  %v88_v17 = vld [vmem:[#allocation7 + $0x38] sm:$0xff] }
  0x2b   :  { %324 = vmatprep.subr.mxu0 %v495_v0  ;;  %359 = vmatprep.subr.mxu1 %v495_v0  ;;  %v71_v18 = vld [vmem:[#allocation5 + $0x38] sm:$0xff]  ;;  %v87_v19 = vld [vmem:[#allocation7 + $0x30] sm:$0xff]  ;;  %v86_v21 = vld [vmem:[#allocation7 + $0x28] sm:$0xff] }
  0x2c   :  { %325 = vmatpush3.msra.mxu0 %v94_v5  ;;  %360 = vmatpush3.msra.mxu1 %v77_v6  ;;  %v70_v20 = vld [vmem:[#allocation5 + $0x30] sm:$0xff]  ;;  %v69_v22 = vld [vmem:[#allocation5 + $0x28] sm:$0xff]  ;;  %v85_v23 = vld [vmem:[#allocation7 + $0x20] sm:$0xff] }
  0x2d   :  { %326 = vmatprep.subr.mxu0 %v495_v0  ;;  %361 = vmatprep.subr.mxu1 %v495_v0  ;;  %v68_v24 = vld [vmem:[#allocation5 + $0x20] sm:$0xff]  ;;  %v84_v25 = vld [vmem:[#allocation7 + $0x18] sm:$0xff]  ;;  %v83_v27 = vld [vmem:[#allocation7 + $0x10] sm:$0xff] }
  0x2e   :  { %327 = vmatpush3.msra.mxu0 %v93_v7  ;;  %362 = vmatpush3.msra.mxu1 %v76_v8  ;;  %v67_v26 = vld [vmem:[#allocation5 + $0x18] sm:$0xff]  ;;  %v66_v28 = vld [vmem:[#allocation5 + $0x10] sm:$0xff]  ;;  %v82_v29 = vld [vmem:[#allocation7 + $0x8] sm:$0xff] }
  0x2f   :  { %328 = vmatprep.subr.mxu0 %v495_v0  ;;  %363 = vmatprep.subr.mxu1 %v495_v0  ;;  %v65_v30 = vld [vmem:[#allocation5 + $0x8] sm:$0xff]  ;;  %v81_v31 = vld [vmem:[#allocation7] sm:$0xff]  ;;  %v80_v33 = vld [vmem:[#allocation2] sm:$0xff] }
  0x30   :  { %329 = vmatpush3.msra.mxu0 %v92_v9  ;;  %364 = vmatpush3.msra.mxu1 %v75_v10  ;;  %v64_v32 = vld [vmem:[#allocation5] sm:$0xff]  ;;  %v63_v34 = vld [vmem:[%s589_s0] sm:$0xff] }
  0x31   :  { %330 = vmatprep.subr.mxu0 %v495_v0  ;;  %365 = vmatprep.subr.mxu1 %v495_v0  ;;  %v285_v38 = vld [vmem:[%s593_s4] ss:$0 sm:$0xff]  ;;  %s498_s4 = smov [#allocation8]  }
  0x32   :  { %331 = vmatpush3.msra.mxu0 %v91_v11  ;;  %366 = vmatpush3.msra.mxu1 %v74_v12  ;;  %v255_v43 = vld [vmem:[%s594_s5] sm:$0xff]  ;;  %s275_s5 = sshll.u32 %s498_s4, 4  ;;  %s276_s5 = int_to_ptr.vmem [resolvable:$true] %s275_s5 }
  0x33   :  { %332 = vmatprep.subr.mxu0 %v495_v0  ;;  %367 = vmatprep.subr.mxu1 %v495_v0  ;;  %s464_s16 = scalar_lea.vmem %s276_s5, 128  ;;  %p469_p2 = scmp.lt.s32.totalorder %s276_s5, %s276_s5 }
  0x34   :  { %333 = vmatpush3.msra.mxu0 %v90_v13  ;;  %368 = vmatpush3.msra.mxu1 %v73_v14  ;;  %p465_p1 = scmp.ne.s32.totalorder %s276_s5, %s464_s16  ;;  %p470_p3 = scmp.lt.s32.totalorder %s464_s16, %s464_s16 }
  0x35   :  { %334 = vmatprep.subr.mxu0 %v495_v0  ;;  %369 = vmatprep.subr.mxu1 %v495_v0 }
  0x36   :  { %335 = vmatpush3.msra.mxu0 %v89_v15  ;;  %370 = vmatpush3.msra.mxu1 %v72_v16  ;;  %p471_p4 = por %p470_p3, %p469_p2 }
  0x37   :  { %336 = vmatprep.subr.mxu0 %v495_v0  ;;  %371 = vmatprep.subr.mxu1 %v495_v0 }
  0x38   :  { %337 = vmatpush3.msra.mxu0 %v88_v17  ;;  %372 = vmatpush3.msra.mxu1 %v71_v18  ;;  %p472_p5 = pnand %p471_p4, %p465_p1 }
  0x39   :  { %338 = vmatprep.subr.mxu0 %v495_v0  ;;  %373 = vmatprep.subr.mxu1 %v495_v0 }
  0x3a   :  { %339 = vmatpush3.msra.mxu0 %v87_v19  ;;  %374 = vmatpush3.msra.mxu1 %v70_v20 }
  0x3b   :  { %340 = vmatprep.subr.mxu0 %v495_v0  ;;  %375 = vmatprep.subr.mxu1 %v495_v0 }
  0x3c   :  { %341 = vmatpush3.msra.mxu0 %v86_v21  ;;  %376 = vmatpush3.msra.mxu1 %v69_v22 }
  0x3d   :  { %342 = vmatprep.subr.mxu0 %v495_v0  ;;  %377 = vmatprep.subr.mxu1 %v495_v0 }
  0x3e   :  { %343 = vmatpush3.msra.mxu0 %v85_v23  ;;  %378 = vmatpush3.msra.mxu1 %v68_v24 }
  0x3f   :  { %344 = vmatprep.subr.mxu0 %v495_v0  ;;  %379 = vmatprep.subr.mxu1 %v495_v0 }
  0x40   :  { %345 = vmatpush3.msra.mxu0 %v84_v25  ;;  %380 = vmatpush3.msra.mxu1 %v67_v26 }
  0x41   :  { %346 = vmatprep.subr.mxu0 %v495_v0  ;;  %381 = vmatprep.subr.mxu1 %v495_v0 }
  0x42   :  { %347 = vmatpush3.msra.mxu0 %v83_v27  ;;  %382 = vmatpush3.msra.mxu1 %v66_v28 }
  0x43   :  { %348 = vmatprep.subr.mxu0 %v495_v0  ;;  %383 = vmatprep.subr.mxu1 %v495_v0 }
  0x44   :  { %349 = vmatpush3.msra.mxu0 %v82_v29  ;;  %384 = vmatpush3.msra.mxu1 %v65_v30 }
  0x45   :  { %350 = vmatprep.subr.mxu0 %v495_v0  ;;  %385 = vmatprep.subr.mxu1 %v495_v0 }
  0x46   :  { %351 = vmatpush3.msra.mxu0 %v81_v31  ;;  %386 = vmatpush3.msra.mxu1 %v64_v32 }
  0x47   :  { %353 = vmatmul.mubr.f32.vlgmr.msra.gmra.mxu0 %v80_v33  ;;  %388 = vmatmul.mubr.f32.vlgmr.msra.gmra.mxu1 %v63_v34 }
  0x48   :  { %399 = vset.pattern.permute.xlu0 %v497_v35 }
 0x107   :  { %v163_v36 = vpop.f32.mrf.mxu0  ;;  %v233_v37 = vpop.f32.mrf.mxu1 }
 0x108   :  { %v234_v39 = vadd.f32 %v233_v37, %v163_v36 }
 0x109   :  { %v354_v40 = vpop.f32.mrf.mxu0  ;;  %v389_v41 = vpop.f32.mrf.mxu1 }
 0x10a   :  { %v244_v42 = vadd.f32 %v285_v38, %v234_v39 }
 0x10c   :  { %245 = vmax.xlane.f32.xlu0 %v244_v42 }
 0x122   :  { %259 = vperm.xlu0 %399, %v255_v43  }
 0x195   :  { %v246_v44 = vpop.xlane.xlu0 %245 }
 0x196   :  { %v247_v45 = vsub.f32 %v244_v42, %v246_v44 }
 0x198   :  { %v248_v46 = vmul.f32 1.442695, %v247_v45 }
 0x19a   :  { %400 = vpow2.f32 %v248_v46 }
 0x19d   :  { %v260_v49 = vpop.permute.xlu0 %259 }
 0x19e   :  { %vm261_vm1 = vcmp.eq.s32.totalorder %v257_v48, %v260_v49 }
 0x19f   :  { %v262_v51 = vsel %vm261_vm1, %v244_v42, 0.0 }
 0x1a7   :  { %v401_v50 = vpop.eup %400 }
 0x1a8   :  { %250 = vadd.xlane.f32.xlu1 %v401_v50 }
 0x1ac   :  { %263 = vadd.xlane.f32.xlu1 %v262_v51 }
 0x231   :  { %v251_v52 = vpop.xlane.xlu1 %250 }
 0x232   :  { %402 = vlog2.f32 %v251_v52 }
 0x235   :  { %v264_v56 = vpop.xlane.xlu1 %263 }
 0x23f   :  { %v403_v53 = vpop.eup %402 }
 0x240   :  { %v253_v54 = vmul.f32 0.6931472, %v403_v53 }
 0x242   :  { %v254_v55 = vadd.f32 %v253_v54, %v246_v44 }
 0x244   :  { %v265_v57 = vsub.f32 %v254_v55, %v264_v56 }
 0x246   :  { %v267_v58 = vsel %vm266_vm2, %v265_v57, %v244_v42 }
 0x247   :  { %268 = vst [vmem:[#allocation8] sm:$0xff] %v267_v58 }
 0x248   :  { %475 = shalt.err (!%p472_p5)
}
 0x249   :  { %278 = dma.vmem_to_hbm [thread:$0]  %s276_s5, 128, %s595_s6, [#allocation4]  }
 0x24a   :  { %488 = dma.done.wait [#allocation4], 128  }
 0x24b   :  { %489 = vsyncadd [#allocation4], 4294967168 }
 0x24c   :  { %282 = vsyncpa [#allocation3], 1 }
 0x24d   :  { %283 = vsyncpa [#allocation6], 1 }
 0x24e   :  { %284 = vsyncpa [#allocation4], 1 }

</bundles_post_ra>
